<compile_context>
chip_gen: v6e
topology: v6e:2x2x1
jax: 0.10.0
libtpu: 0.0.40
codegen_flags: <defaults>
</compile_context>

<pallas_src>
import jax
import jax.numpy as jnp
from jax.experimental import pallas as pl
from jax.experimental.pallas import tpu as pltpu

NUM_LAYERS = 3  # matches `num_layers = 3` in the reference module


def _opc_forward_kernel(x_ref, wab_ref, o_ref):
    """One batch tile: x_ref (TB, D) native dtype, wab_ref (2, D) f32, o_ref (TB, 1)."""
    x = x_ref[...].astype(jnp.float32)          # cast only the VMEM tile, not HBM
    wa = wab_ref[0:1, :]                        # (1, D) = sum_i W_i - wb
    wb = wab_ref[1:2, :]                        # (1, D) = (sum_i i*W_i)/(L-1)

    # Fused contribution of all NUM_LAYERS linear layers: ~4 VPU ops/element.
    contrib = jnp.where(x != 0.0, wa, 0.0) + x * wb      # (TB, D)
    o_ref[...] = jnp.sum(contrib, axis=-1, keepdims=True).astype(o_ref.dtype)


def _choose_tile_b(B, D, itemsize):
    """Pick a batch tile: large (VMEM-budget driven) but >= 2 grid tiles when possible."""
    per_buffer_bytes = 8 << 20                       # 8 MiB of x per pipeline buffer
    vmem_cap_rows = max(8, (per_buffer_bytes // max(1, D * itemsize)) // 8 * 8)
    half_rows = -(-B // 2)                           # ceil(B / 2): >= 2 tiles for v7x TCs
    half_rows = -(-half_rows // 8) * 8               # round up to sublane multiple
    return int(min(vmem_cap_rows, max(8, half_rows)))


def opc_backprop_forward(x, weights, biases, *, tile_b=None):
    """x: (B, in_size) any float dtype, weights: (NUM_LAYERS, in_size), biases: (NUM_LAYERS,).

    Returns (B, 1) float32, matching the PyTorch module's forward().
    """
    B, D = x.shape
    weights = weights.astype(jnp.float32)
    biases = biases.astype(jnp.float32)

    # --- wrapper-side precompute of the refolded weights / bias ------------
    coeff = jnp.arange(NUM_LAYERS, dtype=jnp.float32)       # (L,)
    w_sum = jnp.sum(weights, axis=0)                        # (D,)  = sum_i W_i
    w_iw = jnp.sum(coeff[:, None] * weights, axis=0)        # (D,)  = sum_i i*W_i
    wb = w_iw * jnp.float32(1.0 / (NUM_LAYERS - 1))
    wa = w_sum - wb
    wab = jnp.stack([wa, wb], axis=0)                       # (2, D)
    b_sum = jnp.sum(biases)                                 # scalar, added post-kernel

    # --- batch tiling -------------------------------------------------------
    itemsize = x.dtype.itemsize
    if tile_b is None:
        tile_b = _choose_tile_b(B, D, itemsize)
    assert tile_b % 8 == 0 or tile_b == B, "tile_b must be a multiple of 8 (or B)"
    num_tiles = pl.cdiv(B, tile_b)

    # VMEM budget: 2x double-buffered x tile + headroom; v7x-safe (<= 48 MiB).
    x_tile_bytes = tile_b * D * itemsize
    vmem_limit = int(min(48 << 20, max(24 << 20, 4 * x_tile_bytes)))

    cost = pl.CostEstimate(
        flops=5 * B * D,
        transcendentals=0,
        bytes_accessed=B * D * itemsize + 4 * B + 4 * 2 * D,
    )

    out = pl.pallas_call(
        _opc_forward_kernel,
        out_shape=jax.ShapeDtypeStruct((B, 1), jnp.float32),
        grid=(num_tiles,),
        in_specs=[
            pl.BlockSpec((tile_b, D), lambda i: (i, 0)),    # x, native dtype on the wire
            pl.BlockSpec((2, D), lambda i: (0, 0)),         # refolded weights (wa, wb)
        ],
        out_specs=pl.BlockSpec((tile_b, 1), lambda i: (i, 0)),
        compiler_params=pltpu.CompilerParams(
            dimension_semantics=("parallel",),
            vmem_limit_bytes=vmem_limit,
        ),
        cost_estimate=cost,
    )(x, wab)

    # TODO(synk): for very small D a lane-packed (B*D/128, 128) layout with a
    # pltpu.roll segmented reduce would cut VMEM/VALU work further; not applied.
    return out + b_sum


def _reference_forward(x, weights, biases):
    # Pure-JAX reference of the PyTorch forward (unfused, per-layer loop).
    x = x.astype(jnp.float32)
    one_hot = jnp.where(x != 0.0, 1.0, 0.0)
    step = (x - one_hot) / (NUM_LAYERS - 1)
    out = jnp.zeros((x.shape[0], 1), jnp.float32)
    for i in range(NUM_LAYERS):
        xi = one_hot + i * step
        out = out + xi @ weights[i][:, None] + biases[i]
    return out


if __name__ == "__main__":
    key = jax.random.PRNGKey(0)
    k_x, k_mask, k_w, k_b = jax.random.split(key, 4)

    batch = 200          # not a multiple of the chosen tile -> exercises ragged tail
    in_size = 32

    # Input with some exact zeros so the quant() one-hot branch is exercised.
    x = jax.random.normal(k_x, (batch, in_size), dtype=jnp.float32)
    zero_mask = jax.random.bernoulli(k_mask, p=0.3, shape=(batch, in_size))
    x = jnp.where(zero_mask, 0.0, x)

    # Deterministic nn.Linear(in_size, 1)-style init: U(-1/sqrt(in), 1/sqrt(in)).
    bound = 1.0 / jnp.sqrt(jnp.float32(in_size))
    weights = jax.random.uniform(
        k_w, (NUM_LAYERS, in_size), dtype=jnp.float32, minval=-bound, maxval=bound)
    biases = jax.random.uniform(
        k_b, (NUM_LAYERS,), dtype=jnp.float32, minval=-bound, maxval=bound)

    # f32 path (default tile_b -> 2 tiles, partial last tile).
    out = jax.block_until_ready(opc_backprop_forward(x, weights, biases))
    ref = _reference_forward(x, weights, biases)
    assert out.shape == (batch, 1)
    assert jnp.allclose(out, ref, atol=1e-5, rtol=1e-5), (out, ref)

    # bf16 input path: DMA'd in bf16, cast to f32 only inside the kernel.
    x_bf16 = x.astype(jnp.bfloat16)
    out_bf = jax.block_until_ready(opc_backprop_forward(x_bf16, weights, biases))
    ref_bf = _reference_forward(x_bf16.astype(jnp.float32), weights, biases)
    assert jnp.allclose(out_bf, ref_bf, atol=1e-5, rtol=1e-5), (out_bf, ref_bf)

    # TODO(synk): update()/criterion()/SGD step (training path) are host-side
    # control flow in the PyTorch module and are not part of this forward kernel.
    print("KERNEL_OK")
</pallas_src>

<mosaic_0001>
module attributes {stable_mosaic.version = 11 : i64} {
  func.func @_opc_forward_kernel(%arg0: i32, %arg1: memref<104x32xf32, #tpu.memory_space<vmem>>, %arg2: memref<2x32xf32, #tpu.memory_space<vmem>>, %arg3: memref<104x1xf32, #tpu.memory_space<vmem>>) attributes {dimension_semantics = [#tpu.dimension_semantics<parallel>], iteration_bounds = array<i64: 2>, scalar_prefetch = 0 : i64, scratch_operands = 0 : i64, tpu.core_type = #tpu.core_type<tc>, window_params = [{transform_indices = @transform_0, window_bounds = array<i64: 104, 32>}, {pipeline_mode = #tpu.pipeline_mode<synchronous>, transform_indices = @transform_1, window_bounds = array<i64: 2, 32>}, {transform_indices = @transform_2, window_bounds = array<i64: 104, 1>}]} {
    %c0 = arith.constant 0 : index
    %c0_0 = arith.constant 0 : index
    %0 = vector.load %arg1[%c0, %c0_0] : memref<104x32xf32, #tpu.memory_space<vmem>>, vector<104x32xf32>
    %c0_1 = arith.constant 0 : index
    %c0_2 = arith.constant 0 : index
    %1 = vector.load %arg2[%c0_1, %c0_2] : memref<2x32xf32, #tpu.memory_space<vmem>>, vector<1x32xf32>
    %c1 = arith.constant 1 : index
    %c0_3 = arith.constant 0 : index
    %2 = vector.load %arg2[%c1, %c0_3] : memref<2x32xf32, #tpu.memory_space<vmem>>, vector<1x32xf32>
    %cst = arith.constant 0.000000e+00 : f32
    %3 = vector.broadcast %cst : f32 to vector<104x32xf32>
    %4 = arith.cmpf one, %0, %3 : vector<104x32xf32>
    %cst_4 = arith.constant 0.000000e+00 : f32
    %5 = vector.shape_cast %1 : vector<1x32xf32> to vector<1x32xf32>
    %6 = vector.broadcast %5 : vector<1x32xf32> to vector<104x32xf32>
    %7 = vector.broadcast %cst_4 : f32 to vector<104x32xf32>
    %8 = arith.select %4, %6, %7 : vector<104x32xi1>, vector<104x32xf32>
    %9 = vector.broadcast %2 : vector<1x32xf32> to vector<104x32xf32>
    %10 = arith.mulf %0, %9 : vector<104x32xf32>
    %11 = arith.addf %8, %10 : vector<104x32xf32>
    %cst_5 = arith.constant dense<0.000000e+00> : vector<104xf32>
    %12 = vector.multi_reduction <add>, %11, %cst_5 [1] : vector<104x32xf32> to vector<104xf32>
    %13 = vector.shape_cast %12 : vector<104xf32> to vector<104x1xf32>
    %c0_6 = arith.constant 0 : index
    %c0_7 = arith.constant 0 : index
    %14 = vector.load %arg3[%c0_6, %c0_7] : memref<104x1xf32, #tpu.memory_space<vmem>>, vector<104x1xf32>
    tpu.vector_store %arg3[%c0_6, %c0_7], %13 {strides = array<i32>} : memref<104x1xf32, #tpu.memory_space<vmem>>, vector<104x1xf32>,
    return
  }
  func.func @transform_0(%arg0: i32) -> (i32, i32) {
    %c0_i32 = arith.constant 0 : i32
    %c0_i32_0 = arith.constant 0 : i32
    return %arg0, %c0_i32 : i32, i32
  }
  func.func @transform_1(%arg0: i32) -> (i32, i32) {
    %c0_i32 = arith.constant 0 : i32
    %c0_i32_0 = arith.constant 0 : i32
    %c0_i32_1 = arith.constant 0 : i32
    return %c0_i32, %c0_i32_0 : i32, i32
  }
  func.func @transform_2(%arg0: i32) -> (i32, i32) {
    %c0_i32 = arith.constant 0 : i32
    %c0_i32_0 = arith.constant 0 : i32
    return %arg0, %c0_i32 : i32, i32
  }
}

</mosaic_0001>

<bundles_post_ra>
// kernel: tpu_custom_call.1
= control target key start
LH: loop header
LB: loop body
LE: loop exit
PB: predicated region body
PF: predicated region fallthrough
CT: control target
= control target key end

     0   :  { %s777_s9 = smov 0   ;;  %s779_s10 = smov 0   ;;  %s996_s0 = inlined_call_operand.vmem [shape: f32[200,32], index: 0, kind: input, shape index: {}]   ;;  %s997_s1 = inlined_call_operand.vmem [shape: f32[2,32], index: 1, kind: input, shape index: {}]   ;;  %s998_s2 = inlined_call_operand.vmem [shape: f32[200,1], index: 2, kind: output, shape index: {}]  }
   0x1   :  { %s781_s11 = smov 0  }
   0x2 LB: > { %s790_s12 = sadd.s32 4294967295, %s728_s11   ;;  %s792_s13 = sadd.s32 1, %s728_s11   ;;  %s728_s11 = sphi %s781_s11, %s1005_s11   ;;  %s724_s10 = sphi %s779_s10, %s1004_s10   ;;  %s720_s9 = sphi %s777_s9, %s1003_s9  }
   0x3   : > { %s63_s14 = ssub.s32 %s728_s11, %s792_s13  ;;  %s66_s15 = sadd.s32 1, %s724_s10 }
   0x4   : > { %p64_p0 = scmp.eq.s32.totalorder %s63_s14, 0  ;;  %p76_p1 = scmp.ne.s32.totalorder %s724_s10, %s720_s9 }
   0x5   : > { %p77_p2 = scmp.eq.s32.totalorder %s790_s12, 1  ;;  %p563_p3 = scmp.ge.s32.totalorder %s728_s11, 1 }
   0x6   : > { %s800_s16 = scalar_select %p64_p0, %s724_s10, %s66_s15  }
   0x7   : > { %p802_p4 = por %p77_p2, %p76_p1  ;;  %p121_p5 = scmp.lt.s32.totalorder %s728_s11, 3 }
   0x9   : > { %p122_p6 = pnand %p563_p3, %p121_p5 }
   0xa   : > { %s807_s18 = smul.u32 (!%p122_p6), 13, %s790_s12  ;;  %s143_s28 = sand.u32 (!%p122_p6), 1, %s720_s9  }
   0xb   : > { %125 = sbr.rel (%p122_p6) target bundleno = 242 (0xf2), region = 28 }
   0xc   : > { %p151_p7 = scmp.lt.s32.totalorder (!%p122_p6), %s807_s18, 24  ;;  %s580_s29 = smul.u32 (!%p122_p6), 104, %s143_s28 }
   0xe   : > { %s879_s30 = scalar_lea.vmem (!%p122_p6), [#allocation2], %s580_s29  }
  0x10   : > { %s152_s19 = scalar_select %p151_p7, %s807_s18, 24  ;;  %v814_v0 = vld [vmem:[%s997_s1 + $0x1] ss:$0 sm:$0xff]  ;;  %v824_v1 = vld [vmem:[%s997_s1] ss:$0 sm:$0xff]  ;;  %vm240_vm0 = vcmask 261120  }
  0x11   : > { %vm280_vm14 = vcmask 7168   ;;  %s302_s3 = ssub.s32 (%p802_p4), 25, %s807_s18  ;;  %s579_s4 = smul.u32 (%p802_p4), 104, %s790_s12 }
  0x12   : > { %s564_s20 = sshll.u32 %s152_s19, 3  ;;  %p303_p8 = scmp.lt.s32.totalorder (%p802_p4), %s302_s3, 13 }
  0x13   : > { %s819_s25 = scalar_lea.vmem %s996_s0, %s564_s20  ;;  %s914_s7 = scalar_lea.vmem (%p802_p4), %s998_s2, %s579_s4  }
  0x14   : > { %v165_v2 = vld [vmem:[%s819_s25] sm:$0xff]  ;;  %v167_v3 = vld [vmem:[%s819_s25 + $0x10] sm:$0xff]  ;;  %v166_v4 = vld [vmem:[%s819_s25 + $0x8] sm:$0xff] }
  0x15   : > { %vm180_vm1 = vcmp.ne.f32.partialorder %v165_v2, 0.0  ;;  %v214_v5 = vmul.f32 %v814_v0, %v165_v2  ;;  %vm182_vm2 = vcmp.ne.f32.partialorder %v167_v3, 0.0  ;;  %v216_v6 = vmul.f32 %v814_v0, %v167_v3  ;;  %v168_v7 = vld [vmem:[%s819_s25 + $0x18] sm:$0xff]  ;;  %v169_v8 = vld [vmem:[%s819_s25 + $0x20] sm:$0xff]  ;;  %v170_v15 = vld [vmem:[%s819_s25 + $0x28] sm:$0xff] }
  0x16   : > { %v197_v9 = vsel %vm180_vm1, %v824_v1, 0.0  ;;  %v199_v10 = vsel %vm182_vm2, %v824_v1, 0.0  ;;  %vm181_vm3 = vcmp.ne.f32.partialorder %v166_v4, 0.0  ;;  %v215_v11 = vmul.f32 %v814_v0, %v166_v4  ;;  %v171_v19 = vld [vmem:[%s819_s25 + $0x30] sm:$0xff]  ;;  %v172_v24 = vld [vmem:[%s819_s25 + $0x38] sm:$0xff]  ;;  %v173_v31 = vld [vmem:[%s819_s25 + $0x40] sm:$0xff] }
  0x17   : > { %v227_v12 = vadd.f32 %v214_v5, %v197_v9  ;;  %v229_v13 = vadd.f32 %v216_v6, %v199_v10  ;;  %v198_v14 = vsel %vm181_vm3, %v824_v1, 0.0  ;;  %vm183_vm4 = vcmp.ne.f32.partialorder %v168_v7, 0.0  ;;  %v174_v32 = vld [vmem:[%s819_s25 + $0x48] sm:$0xff]  ;;  %v175_v40 = vld [vmem:[%s819_s25 + $0x50] sm:$0xff]  ;;  %v176_v41 = vld [vmem:[%s819_s25 + $0x58] sm:$0xff] }
  0x18   : > { %v228_v16 = vadd.f32 %v215_v11, %v198_v14  ;;  %v200_v17 = vsel %vm183_vm4, %v824_v1, 0.0  ;;  %v217_v18 = vmul.f32 %v814_v0, %v168_v7  ;;  %vm184_vm5 = vcmp.ne.f32.partialorder %v169_v8, 0.0  ;;  %v177_v50 = vld [vmem:[%s819_s25 + $0x60] sm:$0xff] }
  0x19   : > { %v241_v20 = vsel %vm240_vm0, %v227_v12, 0.0  ;;  %v247_v21 = vsel %vm240_vm0, %v229_v13, 0.0  ;;  %v201_v22 = vsel %vm184_vm5, %v824_v1, 0.0  ;;  %v218_v23 = vmul.f32 %v814_v0, %v169_v8 }
  0x1a   : > { %242 = vadd.xlane.f32.xlu0 %v241_v20  ;;  %248 = vadd.xlane.f32.xlu1 %v247_v21  ;;  %v244_v25 = vsel %vm240_vm0, %v228_v16, 0.0  ;;  %v230_v26 = vadd.f32 %v217_v18, %v200_v17  ;;  %vm185_vm6 = vcmp.ne.f32.partialorder %v170_v15, 0.0  ;;  %v219_v27 = vmul.f32 %v814_v0, %v170_v15 }
  0x1b   : > { %v231_v28 = vadd.f32 %v218_v23, %v201_v22  ;;  %v202_v29 = vsel %vm185_vm6, %v824_v1, 0.0  ;;  %vm186_vm7 = vcmp.ne.f32.partialorder %v171_v19, 0.0  ;;  %v220_v30 = vmul.f32 %v814_v0, %v171_v19 }
  0x1c   : > { %v250_v33 = vsel %vm240_vm0, %v230_v26, 0.0  ;;  %v232_v34 = vadd.f32 %v219_v27, %v202_v29  ;;  %v203_v35 = vsel %vm186_vm7, %v824_v1, 0.0  ;;  %vm187_vm8 = vcmp.ne.f32.partialorder %v172_v24, 0.0 }
  0x1d   : > { %v204_v36 = vsel %vm187_vm8, %v824_v1, 0.0  ;;  %v221_v37 = vmul.f32 %v814_v0, %v172_v24  ;;  %v233_v38 = vadd.f32 %v220_v30, %v203_v35  ;;  %vm188_vm9 = vcmp.ne.f32.partialorder %v173_v31, 0.0 }
  0x1e   : > { %245 = vadd.xlane.f32.xlu0 %v244_v25  ;;  %251 = vadd.xlane.f32.xlu1 %v250_v33  ;;  %v222_v39 = vmul.f32 %v814_v0, %v173_v31  ;;  %vm189_vm10 = vcmp.ne.f32.partialorder %v174_v32, 0.0  ;;  %v253_v42 = vsel %vm240_vm0, %v231_v28, 0.0  ;;  %v256_v43 = vsel %vm240_vm0, %v232_v34, 0.0 }
  0x1f   : > { %v234_v44 = vadd.f32 %v221_v37, %v204_v36  ;;  %v205_v45 = vsel %vm188_vm9, %v824_v1, 0.0  ;;  %v206_v46 = vsel %vm189_vm10, %v824_v1, 0.0  ;;  %v223_v47 = vmul.f32 %v814_v0, %v174_v32 }
  0x20   : > { %vm190_vm11 = vcmp.ne.f32.partialorder %v175_v40, 0.0  ;;  %vm191_vm12 = vcmp.ne.f32.partialorder %v176_v41, 0.0  ;;  %v259_v48 = vsel %vm240_vm0, %v233_v38, 0.0  ;;  %v235_v49 = vadd.f32 %v222_v39, %v205_v45 }
  0x21   : > { %v262_v51 = vsel %vm240_vm0, %v234_v44, 0.0  ;;  %v236_v52 = vadd.f32 %v223_v47, %v206_v46  ;;  %v224_v53 = vmul.f32 %v814_v0, %v175_v40  ;;  %v225_v54 = vmul.f32 %v814_v0, %v176_v41 }
  0x22   : > { %254 = vadd.xlane.f32.xlu0 %v253_v42  ;;  %257 = vadd.xlane.f32.xlu1 %v256_v43  ;;  %v207_v55 = vsel %vm190_vm11, %v824_v1, 0.0  ;;  %v208_v56 = vsel %vm191_vm12, %v824_v1, 0.0  ;;  %vm192_vm13 = vcmp.ne.f32.partialorder %v177_v50, 0.0  ;;  %v265_v57 = vsel %vm240_vm0, %v235_v49, 0.0 }
  0x23   : > { %v268_v58 = vsel %vm240_vm0, %v236_v52, 0.0  ;;  %v237_v59 = vadd.f32 %v224_v53, %v207_v55  ;;  %v238_v60 = vadd.f32 %v225_v54, %v208_v56  ;;  %v226_v61 = vmul.f32 %v814_v0, %v177_v50 }
  0x24   : > { %v209_v62 = vsel %vm192_vm13, %v824_v1, 0.0 }
  0x25   : > { %v271_v63 = vsel %vm240_vm0, %v237_v59, 0.0  ;;  %v274_v2 = vsel %vm240_vm0, %v238_v60, 0.0  ;;  %v239_v3 = vadd.f32 %v226_v61, %v209_v62 }
  0x26   : > { %260 = vadd.xlane.f32.xlu0 %v259_v48  ;;  %263 = vadd.xlane.f32.xlu1 %v262_v51 }
  0x27   : > { %v277_v4 = vsel %vm240_vm0, %v239_v3, 0.0 }
  0x2a   : > { %266 = vadd.xlane.f32.xlu0 %v265_v57  ;;  %269 = vadd.xlane.f32.xlu1 %v268_v58 }
  0x2e   : > { %272 = vadd.xlane.f32.xlu0 %v271_v63  ;;  %275 = vadd.xlane.f32.xlu1 %v274_v2 }
  0x32   : > { %278 = vadd.xlane.f32.xlu0 %v277_v4 }
  0xa3   : > { %v243_v5 = vpop.xlane.xlu0 %242  ;;  %v249_v6 = vpop.xlane.xlu1 %248 }
  0xa4   : > { %281 = vst.msk [vmem:[%s879_s30] sm:$0xff] %vm280_vm14, %v243_v5  ;;  %283 = vst.msk [vmem:[%s879_s30 + $0x10] sm:$0xff] %vm280_vm14, %v249_v6 }
  0xa7   : > { %v246_v0 = vpop.xlane.xlu0 %245  ;;  %v252_v1 = vpop.xlane.xlu1 %251 }
  0xa8   : > { %282 = vst.msk [vmem:[%s879_s30 + $0x8] sm:$0xff] %vm280_vm14, %v246_v0  ;;  %284 = vst.msk [vmem:[%s879_s30 + $0x18] sm:$0xff] %vm280_vm14, %v252_v1 }
  0xab   : > { %v255_v7 = vpop.xlane.xlu0 %254  ;;  %v258_v8 = vpop.xlane.xlu1 %257 }
  0xac   : > { %285 = vst.msk [vmem:[%s879_s30 + $0x20] sm:$0xff] %vm280_vm14, %v255_v7  ;;  %286 = vst.msk [vmem:[%s879_s30 + $0x28] sm:$0xff] %vm280_vm14, %v258_v8 }
  0xaf   : > { %v261_v9 = vpop.xlane.xlu0 %260  ;;  %v264_v10 = vpop.xlane.xlu1 %263 }
  0xb0   : > { %287 = vst.msk [vmem:[%s879_s30 + $0x30] sm:$0xff] %vm280_vm14, %v261_v9  ;;  %288 = vst.msk [vmem:[%s879_s30 + $0x38] sm:$0xff] %vm280_vm14, %v264_v10 }
  0xb3   : > { %v267_v11 = vpop.xlane.xlu0 %266  ;;  %v270_v12 = vpop.xlane.xlu1 %269 }
  0xb4   : > { %289 = vst.msk [vmem:[%s879_s30 + $0x40] sm:$0xff] %vm280_vm14, %v267_v11  ;;  %290 = vst.msk [vmem:[%s879_s30 + $0x48] sm:$0xff] %vm280_vm14, %v270_v12 }
  0xb7   : > { %v273_v13 = vpop.xlane.xlu0 %272  ;;  %v276_v14 = vpop.xlane.xlu1 %275 }
  0xb8   : > { %291 = vst.msk [vmem:[%s879_s30 + $0x50] sm:$0xff] %vm280_vm14, %v273_v13  ;;  %292 = vst.msk [vmem:[%s879_s30 + $0x58] sm:$0xff] %vm280_vm14, %v276_v14  ;;  %300 = sbr.rel (!%p802_p4) target bundleno = 242 (0xf2), region = 32 }
  0xbb   : > { %v279_v15 = vpop.xlane.xlu0 %278 }
  0xbc   : > { %293 = vst.msk [vmem:[%s879_s30 + $0x60] sm:$0xff] %vm280_vm14, %v279_v15 }
  0xbd   : > { %s1007_s3 = smov (!%p303_p8, %s302_s3), 13 }
  0xbe   : > { %s567_s8 = sshll.u32 %s1007_s3, 7 }
  0xbf   : > { %p570_p9 = scmp.eq.s32.totalorder %s567_s8, 0 }
  0xc0   : > { %670 = sdivrem.u32 (!%p570_p9), %s1007_s3, 13 }
  0xc1   : > { %311 = sbr.rel (%p570_p9) target bundleno = 242 (0xf2), region = 36 }
  0xc9   : > { %s920_s9 = spop.drf %670 }
  0xca   : > { %p571_p10 = scmp.le.s32.totalorder %s920_s9, 0 }
  0xcb   : > { %s1000_s11 = smov (!%p571_p10), %s914_s7  ;;  %s1001_s12 = smov (!%p571_p10), %s879_s30 }
  0xcc   : > { %516 = sbr.rel (%p571_p10) target bundleno = 217 (0xd9), region = 112  ;;  %s929_s14 = smov (!%p571_p10), 0  }
  0xcd   : > { %s931_s15 = smov (!%p571_p10), 0  }
  0xd1 LB: >> { %v400_v16 = vld [vmem:[%s736_s12] sm:$0xff]  ;;  %v402_v17 = vld [vmem:[%s736_s12 + $0x8] sm:$0xff]  ;;  %v404_v18 = vld [vmem:[%s736_s12 + $0x10] sm:$0xff]  ;;  %s426_s17 = sadd.s32 1, %s740_s14  ;;  %s394_s15 = sadd.s32 1, %s744_s15   ;;  %s744_s15 = sphi %s931_s15, %s394_s15   ;;  %s740_s14 = sphi %s929_s14, %s1002_s14   ;;  %s736_s12 = sphi %s1001_s12, %s431_s12   ;;  %s732_s11 = sphi %s1000_s11, %s432_s11  }
  0xd2   : >> { %401 = vst [vmem:[%s732_s11] sm:$0xff] %v400_v16  ;;  %403 = vst [vmem:[%s732_s11 + $0x8] sm:$0xff] %v402_v17  ;;  %v406_v19 = vld [vmem:[%s736_s12 + $0x18] sm:$0xff]  ;;  %v408_v20 = vld [vmem:[%s736_s12 + $0x20] sm:$0xff]  ;;  %p427_p11 = scmp.ge.s32.totalorder %s426_s17, %s920_s9  ;;  %p393_p12 = scmp.ge.s32.totalorder %s394_s15, %s920_s9 }
  0xd3   : >> { %405 = vst [vmem:[%s732_s11 + $0x10] sm:$0xff] %v404_v18  ;;  %v410_v21 = vld [vmem:[%s736_s12 + $0x28] sm:$0xff]  ;;  %407 = vst [vmem:[%s732_s11 + $0x18] sm:$0xff] %v406_v19  ;;  %v412_v22 = vld [vmem:[%s736_s12 + $0x30] sm:$0xff] }
  0xd4   : >> { %409 = vst [vmem:[%s732_s11 + $0x20] sm:$0xff] %v408_v20  ;;  %411 = vst [vmem:[%s732_s11 + $0x28] sm:$0xff] %v410_v21  ;;  %v414_v23 = vld [vmem:[%s736_s12 + $0x38] sm:$0xff]  ;;  %v416_v24 = vld [vmem:[%s736_s12 + $0x40] sm:$0xff]  ;;  %s1009_s17 = smov (%p427_p11, %s426_s17), 0  ;;  %396 = sbr.rel (!%p393_p12) target bundleno = 209 (0xd1), region = 118 }
  0xd5   : >> { %413 = vst [vmem:[%s732_s11 + $0x30] sm:$0xff] %v412_v22  ;;  %415 = vst [vmem:[%s732_s11 + $0x38] sm:$0xff] %v414_v23  ;;  %v418_v25 = vld [vmem:[%s736_s12 + $0x48] sm:$0xff]  ;;  %v420_v26 = vld [vmem:[%s736_s12 + $0x50] sm:$0xff]  ;;  %s429_s18 = smul.u32 104, %s1009_s17  ;;  %s1002_s14 = smov %s1009_s17 }
  0xd6   : >> { %417 = vst [vmem:[%s732_s11 + $0x40] sm:$0xff] %v416_v24  ;;  %v422_v27 = vld [vmem:[%s736_s12 + $0x58] sm:$0xff]  ;;  %419 = vst [vmem:[%s732_s11 + $0x48] sm:$0xff] %v418_v25  ;;  %v424_v28 = vld [vmem:[%s736_s12 + $0x60] sm:$0xff] }
  0xd7   : >> { %421 = vst [vmem:[%s732_s11 + $0x50] sm:$0xff] %v420_v26  ;;  %423 = vst [vmem:[%s732_s11 + $0x58] sm:$0xff] %v422_v27  ;;  %s431_s12 = scalar_lea.vmem %s879_s30, %s429_s18 [#allocation2]  }
  0xd8   : >> { %425 = vst [vmem:[%s732_s11 + $0x60] sm:$0xff] %v424_v28  ;;  %s432_s11 = scalar_lea.vmem %s914_s7, %s429_s18  }
  0xd9 PF: > { %672 = sdivrem.u32 %s1007_s3, 13 }
  0xda   : > { %s572_s19 = smul.u32 104, %s920_s9 }
  0xdc   : > { %s437_s20 = scalar_lea.vmem %s879_s30, %s572_s19 [#allocation2]   ;;  %s439_s21 = scalar_lea.vmem %s914_s7, %s572_s19  }
  0xe2   : > { %s673_s22 = spop.drf %672 }
  0xe3   : > { %p574_p13 = scmp.le.s32.totalorder %s673_s22, 0 }
  0xe4   : > { %s746_s23 = smov (!%p574_p13), %s439_s21   ;;  %s750_s24 = smov (!%p574_p13), %s437_s20  }
  0xe5   : > { %530 = sbr.rel (%p574_p13) target bundleno = 242 (0xf2), region = 123  ;;  %s754_s25 = smov (!%p574_p13), 0  }
  0xe6   : > { %s758_s26 = smov (!%p574_p13), 0  }
  0xea LB: >> { %v449_v29 = vld [vmem:[%s752_s24] sm:$0xff]  ;;  %s451_s27 = sadd.s32 1, %s756_s25  ;;  %s443_s26 = sadd.s32 1, %s760_s26   ;;  %s760_s26 = sphi %s758_s26, %s443_s26   ;;  %s756_s25 = sphi %s754_s25, %s755_s25   ;;  %s752_s24 = sphi %s750_s24, %s456_s24   ;;  %s748_s23 = sphi %s746_s23, %s457_s23  }
  0xeb   : >> { %450 = vst [vmem:[%s748_s23] sm:$0xff] %v449_v29  ;;  %p452_p0 = scmp.ge.s32.totalorder %s451_s27, %s673_s22  ;;  %p442_p1 = scmp.ge.s32.totalorder %s443_s26, %s673_s22 }
  0xed   : >> { %s1011_s27 = smov (%p452_p0, %s451_s27), 0  ;;  %445 = sbr.rel (!%p442_p1) target bundleno = 234 (0xea), region = 129 }
  0xee   : >> { %s575_s28 = sshll.u32 %s1011_s27, 3  ;;  %s755_s25 = smov %s1011_s27  }
  0xef   : >> { %s456_s24 = scalar_lea.vmem %s437_s20, %s575_s28 [#allocation2]   ;;  %s457_s23 = scalar_lea.vmem %s439_s21, %s575_s28  }
  0xf2 PF: > { %p9_p2 = scmp.ge.s32.totalorder %s792_s13, 4   ;;  %s1003_s9 = smov %s724_s10 }
  0xf3   : > { %s1004_s10 = smov %s800_s16  ;;  %s1005_s11 = smov %s792_s13 }
  0xf4   :  { %11 = sbr.rel (!%p9_p2) target bundleno = 2 (0x2), region = 140 }

</bundles_post_ra>
